<compile_context>
chip_gen: v7x
topology: tpu7x:2x2x1
jax: 0.10.0
libtpu: 0.0.40
codegen_flags: <defaults>
</compile_context>

<pallas_src>
import math
import functools

import jax
import jax.numpy as jnp
from jax import lax
from jax.experimental import pallas as pl
from jax.experimental.pallas import tpu as pltpu


# ---------------------------------------------------------------------------
# Model dimensions (small, TPU-tile friendly)
# ---------------------------------------------------------------------------
B = 2            # batch
V = 128          # vocab size
D = 128          # hidden / memory dim
F = 256          # FFN dim
M = 8            # num memory tokens
SEG = 16         # input_seg_len (= output_seg_len)
NSEG = 2         # number of segments
T = SEG * NSEG   # total sequence length


def _full_spec(shape):
    """Whole-array block, constant across the grid (weights stay VMEM-resident)."""
    zeros = (0,) * len(shape)
    return pl.BlockSpec(shape, lambda b, s: zeros)


# ---------------------------------------------------------------------------
# Fused Pallas kernel: whole RMT recurrence + shifted CE for one batch element
# ---------------------------------------------------------------------------
def rmt_fused_kernel(x_ref, labels_ref, mask_ref, mem_init_ref,
                     wqkv_ref, wo_ref, w1_ref, b1_ref, w2_ref, b2_ref, lm_ref,
                     logits_ref, mem_out_ref, loss_ref, mem_scr):
    seg = pl.program_id(1)

    # Fresh memory state at the start of each batch element's recurrence.
    @pl.when(seg == 0)
    def _():
        mem_scr[...] = mem_init_ref[...]

    x = x_ref[0, 0].astype(jnp.float32)          # (SEG, D) embedded tokens
    mem = mem_scr[...]                           # (M, D)   carried memory (f32)

    h = jnp.concatenate([mem, x], axis=0)        # (L, D), L = M + SEG
    L = M + SEG
    scale = 1.0 / math.sqrt(D)

    # --- fused QKV projection: one wide bf16 MXU matmul, slice at 128 lanes ---
    qkv = jnp.dot(h.astype(jnp.bfloat16), wqkv_ref[...],
                  preferred_element_type=jnp.float32)          # (L, 3D) f32
    q = qkv[:, :D].astype(jnp.bfloat16)
    k = qkv[:, D:2 * D].astype(jnp.bfloat16)
    v = qkv[:, 2 * D:]

    # --- attention: memory rows see everything; token rows see memory + causal past ---
    scores = jnp.dot(q, k.T, preferred_element_type=jnp.float32) * scale
    row = lax.broadcasted_iota(jnp.int32, (L, L), 0)
    col = lax.broadcasted_iota(jnp.int32, (L, L), 1)
    allow = (row < M) | (col < M) | (col <= row)
    scores = jnp.where(allow, scores, -1e30)

    scores = scores - jnp.max(scores, axis=-1, keepdims=True)
    p = jnp.exp(scores)
    p = p * pl.reciprocal(jnp.sum(p, axis=-1, keepdims=True), approx=True)

    attn = jnp.dot(p.astype(jnp.bfloat16), v.astype(jnp.bfloat16),
                   preferred_element_type=jnp.float32)
    attn = jnp.dot(attn.astype(jnp.bfloat16), wo_ref[...],
                   preferred_element_type=jnp.float32)
    h = h + attn

    # --- FFN (bf16 MXU inputs, f32 accumulation) ---
    ff = jnp.dot(h.astype(jnp.bfloat16), w1_ref[...],
                 preferred_element_type=jnp.float32) + b1_ref[...]
    ff = jnp.maximum(ff, 0.0)
    ff = jnp.dot(ff.astype(jnp.bfloat16), w2_ref[...],
                 preferred_element_type=jnp.float32) + b2_ref[...]
    h = h + ff

    # new memory = processed memory slots; carried in VMEM to the next segment
    new_mem = h[:M]
    mem_scr[...] = new_mem
    mem_out_ref[0] = new_mem

    # logits for this segment, written directly into its slice of (B, T, V)
    seg_logits = jnp.dot(h[M:].astype(jnp.bfloat16), lm_ref[...],
                         preferred_element_type=jnp.float32)   # (SEG, V)
    logits_ref[0] = seg_logits

    # --- fused shifted cross-entropy (per-position, already masked) ---------
    labels = labels_ref[0, 0]                    # (SEG, 1) int32 (pre-shifted)
    mask = mask_ref[0, 0]                        # (SEG, 1) f32
    m = jnp.max(seg_logits, axis=-1, keepdims=True)
    lse = m + jnp.log(jnp.sum(jnp.exp(seg_logits - m), axis=-1, keepdims=True))
    colv = lax.broadcasted_iota(jnp.int32, (SEG, V), 1)
    onehot = (colv == labels).astype(jnp.float32)
    label_logit = jnp.sum(onehot * seg_logits, axis=-1, keepdims=True)
    loss_ref[0] = (lse - label_logit) * mask


def memory_cell_fused(params, x_emb, labels4, mask4):
    """x_emb (B,NSEG,SEG,D) bf16; labels4/mask4 (B,NSEG,SEG,1).

    Returns (full_logits (B,T,V) f32, final_mem (B,M,D) f32,
             per-position masked losses (B,T,1) f32)."""
    logits, final_mem, loss_pp = pl.pallas_call(
        rmt_fused_kernel,
        out_shape=(jax.ShapeDtypeStruct((B, T, V), jnp.float32),
                   jax.ShapeDtypeStruct((B, M, D), jnp.float32),
                   jax.ShapeDtypeStruct((B, T, 1), jnp.float32)),
        grid=(B, NSEG),
        in_specs=[
            pl.BlockSpec((1, 1, SEG, D), lambda b, s: (b, s, 0, 0)),  # x_emb
            pl.BlockSpec((1, 1, SEG, 1), lambda b, s: (b, s, 0, 0)),  # shifted labels
            pl.BlockSpec((1, 1, SEG, 1), lambda b, s: (b, s, 0, 0)),  # loss mask
            _full_spec((M, D)),          # mem_init
            _full_spec((D, 3 * D)),      # wqkv (fused)
            _full_spec((D, D)),          # wo
            _full_spec((D, F)),          # w1
            _full_spec((1, F)),          # b1
            _full_spec((F, D)),          # w2
            _full_spec((1, D)),          # b2
            _full_spec((D, V)),          # lm_head
        ],
        out_specs=[
            pl.BlockSpec((1, SEG, V), lambda b, s: (b, s, 0)),   # logits slab
            pl.BlockSpec((1, M, D), lambda b, s: (b, 0, 0)),     # final memory
            pl.BlockSpec((1, SEG, 1), lambda b, s: (b, s, 0)),   # per-pos loss
        ],
        scratch_shapes=[pltpu.VMEM((M, D), jnp.float32)],        # carried memory
        compiler_params=pltpu.CompilerParams(
            dimension_semantics=("parallel", "arbitrary")),
    )(x_emb, labels4, mask4, params["mem_init"], params["wqkv"], params["wo"],
      params["w1"], params["b1"], params["w2"], params["b2"],
      params["lm_head"])
    return logits, final_mem, loss_pp


# ---------------------------------------------------------------------------
# RecurrentWrapper forward (glue in plain JAX)
# ---------------------------------------------------------------------------
def recurrent_wrapper_forward(params, input_ids, labels=None, labels_mask=None):
    # segment(align='left') with T == SEG * NSEG reduces to a reshape; one
    # embedding gather for the whole sequence instead of one per segment.
    # TODO(synk): ragged last segment (T % input_seg_len != 0) not implemented.
    x_emb = jnp.take(params["emb"], input_ids, axis=0)       # (B, T, D) bf16
    x_emb = x_emb.reshape(B, NSEG, SEG, D)

    # Shifted CE: position t predicts labels[t+1]; mask indexes position t
    # (mirrors shift_logits=logits[...,:-1,:], shift_labels=labels[...,1:],
    #  shift_mask=labels_mask[...,:-1]).  Logits are NOT sliced — the last
    # position is masked out instead, avoiding an unaligned (B,T-1,V) copy.
    pos = jnp.arange(T, dtype=jnp.int32)[None, :]
    last_pos_mask = (pos < T - 1).astype(jnp.float32)              # (1, T)
    if labels is not None:
        shifted_labels = jnp.roll(labels, shift=-1, axis=1).astype(jnp.int32)
        if labels_mask is not None:
            mask = labels_mask.astype(jnp.float32) * last_pos_mask
        else:
            mask = jnp.broadcast_to(last_pos_mask, (B, T))
    else:
        shifted_labels = jnp.zeros((B, T), jnp.int32)
        mask = jnp.zeros((B, T), jnp.float32)

    labels4 = shifted_labels.reshape(B, NSEG, SEG, 1)
    mask4 = jnp.asarray(mask).reshape(B, NSEG, SEG, 1)

    # Fused recurrence over all segments + per-position CE; memory_state never
    # leaves VMEM.  manage_gradients()/is_memory_all only affect autograd.
    full_logits, final_mem, loss_pp = memory_cell_fused(
        params, x_emb, labels4, mask4)

    out = {"logits": full_logits, "memory_state": final_mem}

    if labels is not None:
        denom = jnp.maximum(jnp.sum(mask), 1.0)       # guard all-masked case
        out["loss"] = jnp.sum(loss_pp) / denom
    else:
        out["loss"] = 0.0

    for seg_num in range(NSEG):
        out[f"logits_{seg_num}"] = full_logits[:, seg_num * SEG:(seg_num + 1) * SEG, :]
    return out


# ---------------------------------------------------------------------------
# Deterministic parameter init (weights in bf16 for the MXU; biases/memory f32)
# ---------------------------------------------------------------------------
def init_params(key):
    ks = jax.random.split(key, 7)
    scale = 0.02
    f32, bf16 = jnp.float32, jnp.bfloat16
    return {
        "emb":      (scale * jax.random.normal(ks[0], (V, D), f32)).astype(bf16),
        "wqkv":     (scale * jax.random.normal(ks[1], (D, 3 * D), f32)).astype(bf16),
        "wo":       (scale * jax.random.normal(ks[2], (D, D), f32)).astype(bf16),
        "w1":       (scale * jax.random.normal(ks[3], (D, F), f32)).astype(bf16),
        "b1":       jnp.zeros((1, F), f32),
        "w2":       (scale * jax.random.normal(ks[4], (F, D), f32)).astype(bf16),
        "b2":       jnp.zeros((1, D), f32),
        "lm_head":  (scale * jax.random.normal(ks[5], (D, V), f32)).astype(bf16),
        "mem_init": scale * jax.random.normal(ks[6], (M, D), f32),
    }


if __name__ == "__main__":
    key = jax.random.PRNGKey(0)
    pkey, ikey, lkey = jax.random.split(key, 3)

    params = init_params(pkey)
    input_ids = jax.random.randint(ikey, (B, T), 0, V, dtype=jnp.int32)
    labels = jax.random.randint(lkey, (B, T), 0, V, dtype=jnp.int32)
    labels_mask = jnp.ones((B, T), dtype=jnp.bool_)

    fwd = jax.jit(functools.partial(recurrent_wrapper_forward, params))
    out = fwd(input_ids, labels, labels_mask)
    jax.block_until_ready(out)

    assert out["logits"].shape == (B, T, V)
    assert out["logits_0"].shape == (B, SEG, V)
    assert out["logits_1"].shape == (B, SEG, V)
    assert out["memory_state"].shape == (B, M, D)
    assert jnp.isfinite(out["loss"])
    print("KERNEL_OK")
</pallas_src>

<mosaic_0001>
module attributes {stable_mosaic.version = 11 : i64} {
  func.func @rmt_fused_kernel(%arg0: i32, %arg1: i32, %arg2: memref<1x1x16x128xbf16, #tpu.memory_space<vmem>>, %arg3: memref<1x1x16x1xi32, #tpu.memory_space<vmem>>, %arg4: memref<1x1x16x1xf32, #tpu.memory_space<vmem>>, %arg5: memref<8x128xf32, #tpu.memory_space<vmem>>, %arg6: memref<128x384xbf16, #tpu.memory_space<vmem>>, %arg7: memref<128x128xbf16, #tpu.memory_space<vmem>>, %arg8: memref<128x256xbf16, #tpu.memory_space<vmem>>, %arg9: memref<1x256xf32, #tpu.memory_space<vmem>>, %arg10: memref<256x128xbf16, #tpu.memory_space<vmem>>, %arg11: memref<1x128xf32, #tpu.memory_space<vmem>>, %arg12: memref<128x128xbf16, #tpu.memory_space<vmem>>, %arg13: memref<1x16x128xf32, #tpu.memory_space<vmem>>, %arg14: memref<1x8x128xf32, #tpu.memory_space<vmem>>, %arg15: memref<1x16x1xf32, #tpu.memory_space<vmem>>, %arg16: memref<8x128xf32, #tpu.memory_space<vmem>>) attributes {dimension_semantics = [#tpu.dimension_semantics<parallel>, #tpu.dimension_semantics<arbitrary>], iteration_bounds = array<i64: 2, 2>, scalar_prefetch = 0 : i64, scratch_operands = 1 : i64, tpu.core_type = #tpu.core_type<tc>, window_params = [{transform_indices = @transform_0, window_bounds = array<i64: 1, 1, 16, 128>}, {transform_indices = @transform_1, window_bounds = array<i64: 1, 1, 16, 1>}, {transform_indices = @transform_2, window_bounds = array<i64: 1, 1, 16, 1>}, {pipeline_mode = #tpu.pipeline_mode<synchronous>, transform_indices = @transform_3, window_bounds = array<i64: 8, 128>}, {pipeline_mode = #tpu.pipeline_mode<synchronous>, transform_indices = @transform_4, window_bounds = array<i64: 128, 384>}, {pipeline_mode = #tpu.pipeline_mode<synchronous>, transform_indices = @transform_5, window_bounds = array<i64: 128, 128>}, {pipeline_mode = #tpu.pipeline_mode<synchronous>, transform_indices = @transform_6, window_bounds = array<i64: 128, 256>}, {pipeline_mode = #tpu.pipeline_mode<synchronous>, transform_indices = @transform_7, window_bounds = array<i64: 1, 256>}, {pipeline_mode = #tpu.pipeline_mode<synchronous>, transform_indices = @transform_8, window_bounds = array<i64: 256, 128>}, {pipeline_mode = #tpu.pipeline_mode<synchronous>, transform_indices = @transform_9, window_bounds = array<i64: 1, 128>}, {pipeline_mode = #tpu.pipeline_mode<synchronous>, transform_indices = @transform_10, window_bounds = array<i64: 128, 128>}, {transform_indices = @transform_11, window_bounds = array<i64: 1, 16, 128>}, {transform_indices = @transform_12, window_bounds = array<i64: 1, 8, 128>}, {transform_indices = @transform_13, window_bounds = array<i64: 1, 16, 1>}]} {
    %c0_i32 = arith.constant 0 : i32
    %0 = arith.cmpi eq, %arg1, %c0_i32 : i32
    %1 = arith.extui %0 : i1 to i32
    %c0_i32_0 = arith.constant 0 : i32
    %2 = arith.cmpi ne, %1, %c0_i32_0 : i32
    scf.if %2 {
      %c0_54 = arith.constant 0 : index
      %c0_55 = arith.constant 0 : index
      %101 = vector.load %arg5[%c0_54, %c0_55] : memref<8x128xf32, #tpu.memory_space<vmem>>, vector<8x128xf32>
      %c0_56 = arith.constant 0 : index
      %c0_57 = arith.constant 0 : index
      %102 = vector.load %arg16[%c0_56, %c0_57] : memref<8x128xf32, #tpu.memory_space<vmem>>, vector<8x128xf32>
      tpu.vector_store %arg16[%c0_56, %c0_57], %101 {strides = array<i32>} : memref<8x128xf32, #tpu.memory_space<vmem>>, vector<8x128xf32>,
    } else {
    }
    %c0 = arith.constant 0 : index
    %c0_1 = arith.constant 0 : index
    %c0_2 = arith.constant 0 : index
    %c0_3 = arith.constant 0 : index
    %3 = vector.load %arg2[%c0, %c0_1, %c0_2, %c0_3] : memref<1x1x16x128xbf16, #tpu.memory_space<vmem>>, vector<1x1x16x128xbf16>
    %4 = vector.shape_cast %3 : vector<1x1x16x128xbf16> to vector<16x128xbf16>
    %5 = arith.extf %4 : vector<16x128xbf16> to vector<16x128xf32>
    %c0_4 = arith.constant 0 : index
    %c0_5 = arith.constant 0 : index
    %6 = vector.load %arg16[%c0_4, %c0_5] : memref<8x128xf32, #tpu.memory_space<vmem>>, vector<8x128xf32>
    %7 = tpu.concatenate %6, %5 in 0 : vector<8x128xf32>, vector<16x128xf32> -> vector<24x128xf32>
    %8 = arith.truncf %7 : vector<24x128xf32> to vector<24x128xbf16>
    %c0_6 = arith.constant 0 : index
    %c0_7 = arith.constant 0 : index
    %9 = vector.load %arg6[%c0_6, %c0_7] : memref<128x384xbf16, #tpu.memory_space<vmem>>, vector<128x384xbf16>
    %cst = arith.constant dense<0.000000e+00> : vector<24x384xf32>
    %10 = tpu.matmul %8, %9, %cst {dimension_numbers = #tpu.dot_dimension_numbers<[1], [0], [0], [1], [0, 0, 1, 1], [], []>} : vector<24x128xbf16>, vector<128x384xbf16>, vector<24x384xf32> -> vector<24x384xf32>
    %11 = vector.extract_strided_slice %10 {offsets = [0, 0], sizes = [24, 128], strides = [1, 1]} : vector<24x384xf32> to vector<24x128xf32>
    %12 = arith.truncf %11 : vector<24x128xf32> to vector<24x128xbf16>
    %13 = vector.extract_strided_slice %10 {offsets = [0, 128], sizes = [24, 128], strides = [1, 1]} : vector<24x384xf32> to vector<24x128xf32>
    %14 = arith.truncf %13 : vector<24x128xf32> to vector<24x128xbf16>
    %15 = vector.extract_strided_slice %10 {offsets = [0, 256], sizes = [24, 128], strides = [1, 1]} : vector<24x384xf32> to vector<24x128xf32>
    %16 = tpu.transpose %14, [1, 0] : vector<24x128xbf16> -> vector<128x24xbf16>
    %cst_8 = arith.constant dense<0.000000e+00> : vector<24x24xf32>
    %17 = tpu.matmul %12, %16, %cst_8 {dimension_numbers = #tpu.dot_dimension_numbers<[1], [0], [0], [1], [0, 0, 1, 1], [], []>} : vector<24x128xbf16>, vector<128x24xbf16>, vector<24x24xf32> -> vector<24x24xf32>
    %cst_9 = arith.constant 0.0883883461 : f32
    %18 = vector.broadcast %cst_9 : f32 to vector<24x24xf32>
    %19 = arith.mulf %17, %18 : vector<24x24xf32>
    %20 = tpu.iota {dimensions = array<i32: 0>} : vector<24x24xi32>
    %21 = tpu.iota {dimensions = array<i32: 1>} : vector<24x24xi32>
    %c8_i32 = arith.constant 8 : i32
    %22 = vector.broadcast %c8_i32 : i32 to vector<24x24xi32>
    %23 = arith.cmpi slt, %20, %22 : vector<24x24xi32>
    %c8_i32_10 = arith.constant 8 : i32
    %24 = vector.broadcast %c8_i32_10 : i32 to vector<24x24xi32>
    %25 = arith.cmpi slt, %21, %24 : vector<24x24xi32>
    %26 = arith.ori %23, %25 : vector<24x24xi1>
    %27 = arith.cmpi sle, %21, %20 : vector<24x24xi32>
    %28 = arith.ori %26, %27 : vector<24x24xi1>
    %cst_11 = arith.constant -1.000000e+30 : f32
    %29 = vector.broadcast %cst_11 : f32 to vector<24x24xf32>
    %30 = arith.select %28, %19, %29 : vector<24x24xi1>, vector<24x24xf32>
    %cst_12 = arith.constant dense<0xFF800000> : vector<24xf32>
    %31 = vector.multi_reduction <maximumf>, %30, %cst_12 [1] : vector<24x24xf32> to vector<24xf32>
    %32 = vector.shape_cast %31 : vector<24xf32> to vector<24x1xf32>
    %33 = vector.broadcast %32 : vector<24x1xf32> to vector<24x24xf32>
    %34 = arith.subf %30, %33 : vector<24x24xf32>
    %35 = math.exp %34 : vector<24x24xf32>
    %cst_13 = arith.constant dense<0.000000e+00> : vector<24xf32>
    %36 = vector.multi_reduction <add>, %35, %cst_13 [1] : vector<24x24xf32> to vector<24xf32>
    %37 = vector.shape_cast %36 : vector<24xf32> to vector<24x1xf32>
    %38 = tpu.reciprocal %37 {approx = true} : vector<24x1xf32> -> vector<24x1xf32>
    %39 = vector.broadcast %38 : vector<24x1xf32> to vector<24x24xf32>
    %40 = arith.mulf %35, %39 : vector<24x24xf32>
    %41 = arith.truncf %40 : vector<24x24xf32> to vector<24x24xbf16>
    %42 = arith.truncf %15 : vector<24x128xf32> to vector<24x128xbf16>
    %cst_14 = arith.constant dense<0.000000e+00> : vector<24x128xf32>
    %43 = tpu.matmul %41, %42, %cst_14 {dimension_numbers = #tpu.dot_dimension_numbers<[1], [0], [0], [1], [0, 0, 1, 1], [], []>} : vector<24x24xbf16>, vector<24x128xbf16>, vector<24x128xf32> -> vector<24x128xf32>
    %44 = arith.truncf %43 : vector<24x128xf32> to vector<24x128xbf16>
    %c0_15 = arith.constant 0 : index
    %c0_16 = arith.constant 0 : index
    %45 = vector.load %arg7[%c0_15, %c0_16] : memref<128x128xbf16, #tpu.memory_space<vmem>>, vector<128x128xbf16>
    %cst_17 = arith.constant dense<0.000000e+00> : vector<24x128xf32>
    %46 = tpu.matmul %44, %45, %cst_17 {dimension_numbers = #tpu.dot_dimension_numbers<[1], [0], [0], [1], [0, 0, 1, 1], [], []>} : vector<24x128xbf16>, vector<128x128xbf16>, vector<24x128xf32> -> vector<24x128xf32>
    %47 = arith.addf %7, %46 : vector<24x128xf32>
    %48 = arith.truncf %47 : vector<24x128xf32> to vector<24x128xbf16>
    %c0_18 = arith.constant 0 : index
    %c0_19 = arith.constant 0 : index
    %49 = vector.load %arg8[%c0_18, %c0_19] : memref<128x256xbf16, #tpu.memory_space<vmem>>, vector<128x256xbf16>
    %cst_20 = arith.constant dense<0.000000e+00> : vector<24x256xf32>
    %50 = tpu.matmul %48, %49, %cst_20 {dimension_numbers = #tpu.dot_dimension_numbers<[1], [0], [0], [1], [0, 0, 1, 1], [], []>} : vector<24x128xbf16>, vector<128x256xbf16>, vector<24x256xf32> -> vector<24x256xf32>
    %c0_21 = arith.constant 0 : index
    %c0_22 = arith.constant 0 : index
    %51 = vector.load %arg9[%c0_21, %c0_22] : memref<1x256xf32, #tpu.memory_space<vmem>>, vector<1x256xf32>
    %52 = vector.broadcast %51 : vector<1x256xf32> to vector<24x256xf32>
    %53 = arith.addf %50, %52 : vector<24x256xf32>
    %cst_23 = arith.constant 0.000000e+00 : f32
    %54 = vector.broadcast %cst_23 : f32 to vector<24x256xf32>
    %55 = arith.maximumf %53, %54 : vector<24x256xf32>
    %56 = arith.truncf %55 : vector<24x256xf32> to vector<24x256xbf16>
    %c0_24 = arith.constant 0 : index
    %c0_25 = arith.constant 0 : index
    %57 = vector.load %arg10[%c0_24, %c0_25] : memref<256x128xbf16, #tpu.memory_space<vmem>>, vector<256x128xbf16>
    %cst_26 = arith.constant dense<0.000000e+00> : vector<24x128xf32>
    %58 = tpu.matmul %56, %57, %cst_26 {dimension_numbers = #tpu.dot_dimension_numbers<[1], [0], [0], [1], [0, 0, 1, 1], [], []>} : vector<24x256xbf16>, vector<256x128xbf16>, vector<24x128xf32> -> vector<24x128xf32>
    %c0_27 = arith.constant 0 : index
    %c0_28 = arith.constant 0 : index
    %59 = vector.load %arg11[%c0_27, %c0_28] : memref<1x128xf32, #tpu.memory_space<vmem>>, vector<1x128xf32>
    %60 = vector.broadcast %59 : vector<1x128xf32> to vector<24x128xf32>
    %61 = arith.addf %58, %60 : vector<24x128xf32>
    %62 = arith.addf %47, %61 : vector<24x128xf32>
    %63 = vector.extract_strided_slice %62 {offsets = [0, 0], sizes = [8, 128], strides = [1, 1]} : vector<24x128xf32> to vector<8x128xf32>
    %c0_29 = arith.constant 0 : index
    %c0_30 = arith.constant 0 : index
    %64 = vector.load %arg16[%c0_29, %c0_30] : memref<8x128xf32, #tpu.memory_space<vmem>>, vector<8x128xf32>
    tpu.vector_store %arg16[%c0_29, %c0_30], %63 {strides = array<i32>} : memref<8x128xf32, #tpu.memory_space<vmem>>, vector<8x128xf32>,
    %c0_31 = arith.constant 0 : index
    %c0_32 = arith.constant 0 : index
    %c0_33 = arith.constant 0 : index
    %65 = vector.load %arg14[%c0_31, %c0_32, %c0_33] : memref<1x8x128xf32, #tpu.memory_space<vmem>>, vector<1x8x128xf32>
    %66 = vector.shape_cast %65 : vector<1x8x128xf32> to vector<8x128xf32>
    %67 = vector.shape_cast %63 : vector<8x128xf32> to vector<1x8x128xf32>
    tpu.vector_store %arg14[%c0_31, %c0_32, %c0_33], %67 {strides = array<i32>} : memref<1x8x128xf32, #tpu.memory_space<vmem>>, vector<1x8x128xf32>,
    %68 = vector.extract_strided_slice %62 {offsets = [8, 0], sizes = [16, 128], strides = [1, 1]} : vector<24x128xf32> to vector<16x128xf32>
    %69 = arith.truncf %68 : vector<16x128xf32> to vector<16x128xbf16>
    %c0_34 = arith.constant 0 : index
    %c0_35 = arith.constant 0 : index
    %70 = vector.load %arg12[%c0_34, %c0_35] : memref<128x128xbf16, #tpu.memory_space<vmem>>, vector<128x128xbf16>
    %cst_36 = arith.constant dense<0.000000e+00> : vector<16x128xf32>
    %71 = tpu.matmul %69, %70, %cst_36 {dimension_numbers = #tpu.dot_dimension_numbers<[1], [0], [0], [1], [0, 0, 1, 1], [], []>} : vector<16x128xbf16>, vector<128x128xbf16>, vector<16x128xf32> -> vector<16x128xf32>
    %c0_37 = arith.constant 0 : index
    %c0_38 = arith.constant 0 : index
    %c0_39 = arith.constant 0 : index
    %72 = vector.load %arg13[%c0_37, %c0_38, %c0_39] : memref<1x16x128xf32, #tpu.memory_space<vmem>>, vector<1x16x128xf32>
    %73 = vector.shape_cast %72 : vector<1x16x128xf32> to vector<16x128xf32>
    %74 = vector.shape_cast %71 : vector<16x128xf32> to vector<1x16x128xf32>
    tpu.vector_store %arg13[%c0_37, %c0_38, %c0_39], %74 {strides = array<i32>} : memref<1x16x128xf32, #tpu.memory_space<vmem>>, vector<1x16x128xf32>,
    %c0_40 = arith.constant 0 : index
    %c0_41 = arith.constant 0 : index
    %c0_42 = arith.constant 0 : index
    %c0_43 = arith.constant 0 : index
    %75 = vector.load %arg3[%c0_40, %c0_41, %c0_42, %c0_43] : memref<1x1x16x1xi32, #tpu.memory_space<vmem>>, vector<1x1x16x1xi32>
    %76 = vector.shape_cast %75 : vector<1x1x16x1xi32> to vector<16x1xi32>
    %c0_44 = arith.constant 0 : index
    %c0_45 = arith.constant 0 : index
    %c0_46 = arith.constant 0 : index
    %c0_47 = arith.constant 0 : index
    %77 = vector.load %arg4[%c0_44, %c0_45, %c0_46, %c0_47] : memref<1x1x16x1xf32, #tpu.memory_space<vmem>>, vector<1x1x16x1xf32>
    %78 = vector.shape_cast %77 : vector<1x1x16x1xf32> to vector<16x1xf32>
    %cst_48 = arith.constant dense<0xFF800000> : vector<16xf32>
    %79 = vector.multi_reduction <maximumf>, %71, %cst_48 [1] : vector<16x128xf32> to vector<16xf32>
    %80 = vector.shape_cast %79 : vector<16xf32> to vector<16x1xf32>
    %81 = vector.broadcast %80 : vector<16x1xf32> to vector<16x128xf32>
    %82 = arith.subf %71, %81 : vector<16x128xf32>
    %83 = math.exp %82 : vector<16x128xf32>
    %cst_49 = arith.constant dense<0.000000e+00> : vector<16xf32>
    %84 = vector.multi_reduction <add>, %83, %cst_49 [1] : vector<16x128xf32> to vector<16xf32>
    %85 = vector.shape_cast %84 : vector<16xf32> to vector<16x1xf32>
    %86 = math.log %85 : vector<16x1xf32>
    %87 = arith.addf %80, %86 : vector<16x1xf32>
    %88 = tpu.iota {dimensions = array<i32: 1>} : vector<16x128xi32>
    %89 = vector.broadcast %76 : vector<16x1xi32> to vector<16x128xi32>
    %90 = arith.cmpi eq, %88, %89 : vector<16x128xi32>
    %91 = arith.extui %90 : vector<16x128xi1> to vector<16x128xi32>
    %92 = arith.sitofp %91 : vector<16x128xi32> to vector<16x128xf32>
    %93 = arith.mulf %92, %71 : vector<16x128xf32>
    %cst_50 = arith.constant dense<0.000000e+00> : vector<16xf32>
    %94 = vector.multi_reduction <add>, %93, %cst_50 [1] : vector<16x128xf32> to vector<16xf32>
    %95 = vector.shape_cast %94 : vector<16xf32> to vector<16x1xf32>
    %96 = arith.subf %87, %95 : vector<16x1xf32>
    %97 = arith.mulf %96, %78 : vector<16x1xf32>
    %c0_51 = arith.constant 0 : index
    %c0_52 = arith.constant 0 : index
    %c0_53 = arith.constant 0 : index
    %98 = vector.load %arg15[%c0_51, %c0_52, %c0_53] : memref<1x16x1xf32, #tpu.memory_space<vmem>>, vector<1x16x1xf32>
    %99 = vector.shape_cast %98 : vector<1x16x1xf32> to vector<16x1xf32>
    %100 = vector.shape_cast %97 : vector<16x1xf32> to vector<1x16x1xf32>
    tpu.vector_store %arg15[%c0_51, %c0_52, %c0_53], %100 {strides = array<i32>} : memref<1x16x1xf32, #tpu.memory_space<vmem>>, vector<1x16x1xf32>,
    return
  }
  func.func @transform_0(%arg0: i32, %arg1: i32) -> (i32, i32, i32, i32) {
    %c0_i32 = arith.constant 0 : i32
    %c0_i32_0 = arith.constant 0 : i32
    %c0_i32_1 = arith.constant 0 : i32
    return %arg0, %arg1, %c0_i32, %c0_i32_0 : i32, i32, i32, i32
  }
  func.func @transform_1(%arg0: i32, %arg1: i32) -> (i32, i32, i32, i32) {
    %c0_i32 = arith.constant 0 : i32
    %c0_i32_0 = arith.constant 0 : i32
    %c0_i32_1 = arith.constant 0 : i32
    return %arg0, %arg1, %c0_i32, %c0_i32_0 : i32, i32, i32, i32
  }
  func.func @transform_2(%arg0: i32, %arg1: i32) -> (i32, i32, i32, i32) {
    %c0_i32 = arith.constant 0 : i32
    %c0_i32_0 = arith.constant 0 : i32
    %c0_i32_1 = arith.constant 0 : i32
    return %arg0, %arg1, %c0_i32, %c0_i32_0 : i32, i32, i32, i32
  }
  func.func @transform_3(%arg0: i32, %arg1: i32) -> (i32, i32) {
    %c0_i32 = arith.constant 0 : i32
    %c0_i32_0 = arith.constant 0 : i32
    %c0_i32_1 = arith.constant 0 : i32
    return %c0_i32, %c0_i32_0 : i32, i32
  }
  func.func @transform_4(%arg0: i32, %arg1: i32) -> (i32, i32) {
    %c0_i32 = arith.constant 0 : i32
    %c0_i32_0 = arith.constant 0 : i32
    %c0_i32_1 = arith.constant 0 : i32
    return %c0_i32, %c0_i32_0 : i32, i32
  }
  func.func @transform_5(%arg0: i32, %arg1: i32) -> (i32, i32) {
    %c0_i32 = arith.constant 0 : i32
    %c0_i32_0 = arith.constant 0 : i32
    %c0_i32_1 = arith.constant 0 : i32
    return %c0_i32, %c0_i32_0 : i32, i32
  }
  func.func @transform_6(%arg0: i32, %arg1: i32) -> (i32, i32) {
    %c0_i32 = arith.constant 0 : i32
    %c0_i32_0 = arith.constant 0 : i32
    %c0_i32_1 = arith.constant 0 : i32
    return %c0_i32, %c0_i32_0 : i32, i32
  }
  func.func @transform_7(%arg0: i32, %arg1: i32) -> (i32, i32) {
    %c0_i32 = arith.constant 0 : i32
    %c0_i32_0 = arith.constant 0 : i32
    %c0_i32_1 = arith.constant 0 : i32
    return %c0_i32, %c0_i32_0 : i32, i32
  }
  func.func @transform_8(%arg0: i32, %arg1: i32) -> (i32, i32) {
    %c0_i32 = arith.constant 0 : i32
    %c0_i32_0 = arith.constant 0 : i32
    %c0_i32_1 = arith.constant 0 : i32
    return %c0_i32, %c0_i32_0 : i32, i32
  }
  func.func @transform_9(%arg0: i32, %arg1: i32) -> (i32, i32) {
    %c0_i32 = arith.constant 0 : i32
    %c0_i32_0 = arith.constant 0 : i32
    %c0_i32_1 = arith.constant 0 : i32
    return %c0_i32, %c0_i32_0 : i32, i32
  }
  func.func @transform_10(%arg0: i32, %arg1: i32) -> (i32, i32) {
    %c0_i32 = arith.constant 0 : i32
    %c0_i32_0 = arith.constant 0 : i32
    %c0_i32_1 = arith.constant 0 : i32
    return %c0_i32, %c0_i32_0 : i32, i32
  }
  func.func @transform_11(%arg0: i32, %arg1: i32) -> (i32, i32, i32) {
    %c0_i32 = arith.constant 0 : i32
    %c0_i32_0 = arith.constant 0 : i32
    return %arg0, %arg1, %c0_i32 : i32, i32, i32
  }
  func.func @transform_12(%arg0: i32, %arg1: i32) -> (i32, i32, i32) {
    %c0_i32 = arith.constant 0 : i32
    %c0_i32_0 = arith.constant 0 : i32
    %c0_i32_1 = arith.constant 0 : i32
    return %arg0, %c0_i32, %c0_i32_0 : i32, i32, i32
  }
  func.func @transform_13(%arg0: i32, %arg1: i32) -> (i32, i32, i32) {
    %c0_i32 = arith.constant 0 : i32
    %c0_i32_0 = arith.constant 0 : i32
    return %arg0, %arg1, %c0_i32 : i32, i32, i32
  }
}

</mosaic_0001>

<bundles_post_ra>
// kernel: recurrent_wrapper_forward.1
= control target key start
LH: loop header
LB: loop body
LE: loop exit
PB: predicated region body
PF: predicated region fallthrough
CT: control target
= control target key end

     0   :  { %s2964_s0 = inlined_call_operand.vmem [shape: bf16[2,2,16,128], index: 0, kind: input, shape index: {}]   ;;  %s2965_s1 = inlined_call_operand.vmem [shape: s32[2,2,16,1], index: 1, kind: input, shape index: {}]   ;;  %s2966_s2 = inlined_call_operand.vmem [shape: f32[2,2,16,1], index: 2, kind: input, shape index: {}]   ;;  %s2967_s3 = inlined_call_operand.vmem [shape: f32[8,128], index: 3, kind: input, shape index: {}]   ;;  %s2968_s4 = inlined_call_operand.vmem [shape: bf16[128,384], index: 4, kind: input, shape index: {}]   ;;  %s2969_s5 = inlined_call_operand.vmem [shape: bf16[128,128], index: 5, kind: input, shape index: {}]   ;;  %s2970_s6 = inlined_call_operand.vmem [shape: bf16[128,256], index: 6, kind: input, shape index: {}]   ;;  %s2971_s7 = inlined_call_operand.vmem [shape: f32[1,256], index: 7, kind: input, shape index: {}]   ;;  %s2972_s8 = inlined_call_operand.vmem [shape: bf16[256,128], index: 8, kind: input, shape index: {}]   ;;  %s2973_s9 = inlined_call_operand.vmem [shape: f32[1,128], index: 9, kind: input, shape index: {}]   ;;  %s2974_s10 = inlined_call_operand.vmem [shape: bf16[128,128], index: 10, kind: input, shape index: {}]   ;;  %s2975_s11 = inlined_call_operand.vmem [shape: f32[2,32,128], index: 11, kind: output, shape index: {0}]   ;;  %s2976_s12 = inlined_call_operand.hbm [shape: f32[2,8,128], index: 12, kind: output, shape index: {1}]   ;;  %s2977_s13 = inlined_call_operand.vmem [shape: f32[2,32,1], index: 13, kind: output, shape index: {2}]  }
   0x1   :  { %2992 = sst [smem:[#allocation18_spill]] %s2971_s7 }
   0x2   :  { %2993 = sst [smem:[#allocation19_spill]] %s2973_s9 }
   0x3   :  { %2994 = sst [smem:[#allocation20_spill]] %s2976_s12 }
   0x4   :  { %19 = vsyncpa [#allocation4], 0 }
   0x5   :  { %21 = vsyncpa [#allocation4 + $0x1], 0  ;;  %s2495_s25 = smov 0   ;;  %s2497_s26 = smov 0  }
   0x6   :  { %s2499_s27 = smov 0   ;;  %s2501_s28 = smov 0  }
   0x7   :  { %s2503_s29 = smov 0   ;;  %s2505_s30 = smov 0  }
   0x8   :  { %s2507_s14 = smov 0   ;;  %s2509_s15 = smov 0  }
   0x9 LB: > { %2995 = sst [smem:[#allocation6_spill]] %s2391_s25  ;;  %s1894_s16 = sadd.s32 4294967295, %s2419_s15   ;;  %s2419_s15 = sphi %s2509_s15, %s27_s15   ;;  %s2415_s14 = sphi %s2507_s14, %s3025_s14   ;;  %s2411_s30 = sphi %s2505_s30, %s3024_s30   ;;  %s2407_s29 = sphi %s2503_s29, %s3023_s29   ;;  %s2403_s28 = sphi %s2501_s28, %s3022_s28   ;;  %s2399_s27 = sphi %s2499_s27, %s3021_s27   ;;  %s2395_s26 = sphi %s2497_s26, %s3020_s26   ;;  %s2391_s25 = sphi %s2495_s25, %s3019_s25  }
   0xa   : > { %2996 = sst [smem:[#allocation7_spill]] %s2395_s26  ;;  %s1895_s17 = sadd.s32 4294967294, %s2419_s15  }
   0xb   : > { %2997 = sst [smem:[#allocation8_spill]] %s2399_s27  ;;  %s36_s18 = sadd.s32 1, %s2411_s30 }
   0xc   : > { %2998 = sst [smem:[#allocation9_spill]] %s2407_s29  ;;  %p37_p0 = scmp.ge.s32.totalorder %s36_s18, 2 }
   0xd   : > { %2999 = sst [smem:[#allocation10_spill]] %s2411_s30  ;;  %s39_s19 = sadd.s32 1, %s2415_s14 }
   0xe   : > { %3000 = sst [smem:[#allocation11_spill]] %s2415_s14  ;;  %p336_p1 = scmp.ne.s32.totalorder %s2399_s27, %s2395_s26 }
   0xf   : > { %3001 = sst [smem:[#allocation12_spill]] %s2419_s15  ;;  %p337_p2 = scmp.eq.s32.totalorder %s1894_s16, 3 }
  0x10   : > { %s3027_s18 = smov (%p37_p0, %s36_s18), 0  ;;  %s3029_s19 = smov (!%p37_p0, %s39_s19), %s2415_s14 }
  0x11   : > { %3002 = sst [smem:[#allocation13_spill]] %s3027_s18  ;;  %p2544_p3 = por %p337_p2, %p336_p1 }
  0x12   : > { %p342_p4 = scmp.ne.s32.totalorder %s2395_s26, %s2391_s25  ;;  %p41_p5 = scmp.ge.s32.totalorder %s3029_s19, 2 }
  0x13   : > { %s3003_s20 = scalar_select %p2544_p3, 1, 0 }
  0x14   : > { %p343_p6 = scmp.eq.s32.totalorder %s1895_s17, 3  ;;  %p1898_p7 = scmp.ge.s32.totalorder %s2419_s15, 1 }
  0x15   : > { %3004 = sst [smem:[#allocation14_spill]] %s3003_s20  ;;  %p449_p8 = scmp.lt.s32.totalorder %s2419_s15, 5 }
  0x16   : > { %s3031_s19 = smov (%p41_p5, %s3029_s19), 0  ;;  %p2554_p9 = por %p343_p6, %p342_p4 }
  0x17   : > { %3005 = sst [smem:[#allocation15_spill]] %s3031_s19  ;;  %p450_p10 = pnand %p1898_p7, %p449_p8 }
  0x18   : > { %s3006_s21 = scalar_select %p2554_p9, 1, 0 }
  0x19   : > { %s323_s22 = ssub.s32 %s2415_s14, %s3031_s19  ;;  %s326_s23 = sadd.s32 1, %s2399_s27 }
  0x1a   : > { %3007 = sst [smem:[#allocation16_spill]] %s3006_s21  ;;  %p324_p11 = scmp.eq.s32.totalorder %s323_s22, 0 }
  0x1b   : > { %453 = sbr.rel (%p450_p10) target bundleno = 2268 (0x8dc), region = 64  ;;  %s2989_s16 = sand.u32 (!%p450_p10), 1, %s2395_s26  }
  0x1c   : > { %s2562_s24 = scalar_select %p324_p11, %s2399_s27, %s326_s23  }
  0x1d   : > { %p533_p12 = scmp.lt.s32.totalorder (!%p450_p10), %s2407_s29, 1  ;;  %s2568_s17 = sshll.u32 (!%p450_p10), %s2989_s16, 3 }
  0x1e   : > { %3008 = sst [smem:[#allocation17_spill]] %s2562_s24  ;;  %p535_p13 = scmp.lt.s32.totalorder (!%p450_p10), %s2403_s28, 1 }
  0x1f   : > { %s1909_s18 = sshll.u32 (!%p450_p10), %s2403_s28, 1  ;;  %s521_s12 = scalar_lea.vmem (!%p450_p10), [#allocation3], %s2568_s17 }
  0x20   : > { %p563_p0 = scmp.lt.s32.totalorder (!%p450_p10), %s1909_s18, 3  ;;  %p1915_p1 = scmp.ne.s32.totalorder (!%p450_p10), %s2403_s28, 0 }
  0x22   : > { %s534_s19 = scalar_select %p533_p12, %s2407_s29, 1 }
  0x23   : > { %s536_s22 = scalar_select %p535_p13, %s2403_s28, 1 }
  0x24   : > { %s1901_s23 = sshll.u32 %s534_s19, 2  ;;  %s3033_s18 = smov (!%p563_p0, %s1909_s18), 3  ;;  %v585_v0 = vld [vmem:[%s2967_s3] sm:$0xff] (!%p1915_p1) }
  0x25   : > { %s1900_s14 = sshll.u32 %s536_s22, 1  ;;  %584 = sbr.rel (%p1915_p1) target bundleno = 44 (0x2c), region = 68  ;;  %586 = vst [vmem:[#allocation2] sm:$0xff] (!%p1915_p1), %v585_v0 }
  0x26   : > { %s539_s30 = sadd.s32 %s1901_s23, %s1900_s14  ;;  %s566_s14 = sadd.s32 %s1901_s23, %s3033_s18 }
  0x27   : > { %s1902_s24 = sshll.u32 %s539_s30, 2  ;;  %s1905_s27 = sshll.u32 %s539_s30, 3 }
  0x28   : > { %s2577_s15 = scalar_lea.vmem %s2964_s0, %s1902_s24  ;;  %s2582_s16 = scalar_lea.vmem %s2965_s1, %s1905_s27 }
  0x29   : > { %s2587_s9 = scalar_lea.vmem %s2966_s2, %s1905_s27  ;;  %s1911_s19 = sshll.u32 %s566_s14, 3 }
  0x2a   : > { %s2592_s7 = scalar_lea.vmem %s2975_s11, %s1911_s19  ;;  %s2597_s24 = scalar_lea.vmem %s2977_s13, %s1911_s19 }
  0x2c PF: > { %v2216_v1 = vld [vmem:[%s2968_s4 + $0x4] ss:$12 sps:$4 sm:$0xff]   ;;  %v2218_v2 = vld [vmem:[%s2968_s4] ss:$12 sps:$4 sm:$0xff]   ;;  %v2421_v3 = vmov 0   ;;  %v908_v44 = vlaneseq  ;;  %vm930_vm4 = vcmask 195584  }
  0x2d   : > { %786 = vmatprep.mubr.bf16.mxu0 %v2421_v3  ;;  %2215 = vset.pattern.permute.xlu1 %v2421_v3  ;;  %v2219_v4 = vld [vmem:[%s2968_s4 + $0x1c] ss:$12 sps:$4 sm:$0xff]   ;;  %v2221_v5 = vld [vmem:[%s2968_s4 + $0x18] ss:$12 sps:$4 sm:$0xff]   ;;  %v2222_v6 = vld [vmem:[%s2968_s4 + $0x34] ss:$12 sps:$4 sm:$0xff]  }
  0x2e   : > { %754 = vmatprep.subr.bf16.mxu0 %v2216_v1  ;;  %2214 = vset.pattern.permute.xlu0 %v2421_v3  ;;  %v2224_v7 = vld [vmem:[%s2968_s4 + $0x30] ss:$12 sps:$4 sm:$0xff]   ;;  %v2225_v8 = vld [vmem:[%s2968_s4 + $0x4c] ss:$12 sps:$4 sm:$0xff]   ;;  %v2227_v9 = vld [vmem:[%s2968_s4 + $0x48] ss:$12 sps:$4 sm:$0xff]  }
  0x2f   : > { %755 = vmatpush1.bf16.msra.mxu0 %v2218_v2  ;;  %v2632_v10 = vld [vmem:[%s2577_s15] sm:$0xf]  ;;  %v2228_v11 = vld [vmem:[%s2968_s4 + $0x64] ss:$12 sps:$4 sm:$0xff]   ;;  %v2231_v16 = vld [vmem:[%s2968_s4 + $0x7c] ss:$12 sps:$4 sm:$0xff]  }
  0x30   : > { %756 = vmatprep.subr.bf16.mxu0 %v2219_v4  ;;  %v589_v12 = vunpack.c.l.bf16 %v2632_v10  ;;  %v2638_v13 = vld [vmem:[#allocation2] sm:$0xff]  ;;  %v2236_v19 = vld [vmem:[%s2968_s4 + $0x90] ss:$12 sps:$4 sm:$0xff]   ;;  %v2237_v20 = vld [vmem:[%s2968_s4 + $0xac] ss:$12 sps:$4 sm:$0xff]   ;;  %v2695_v45 = vshrl.u32 %v908_v44, 7 }
  0x31   : > { %v2230_v14 = vld [vmem:[%s2968_s4 + $0x60] ss:$12 sps:$4 sm:$0xff]   ;;  %v2233_v17 = vld [vmem:[%s2968_s4 + $0x78] ss:$12 sps:$4 sm:$0xff]   ;;  %v2239_v21 = vld [vmem:[%s2968_s4 + $0xa8] ss:$12 sps:$4 sm:$0xff]  }
  0x32   : > { %v592_v15 = vpack.c.bf16 %v589_v12, %v2638_v13  ;;  %v2234_v18 = vld [vmem:[%s2968_s4 + $0x94] ss:$12 sps:$4 sm:$0xff]   ;;  %v2665_v22 = vld [vmem:[%s2577_s15 + $0x4] sm:$0xf]  ;;  %v2244_v39 = vld [vmem:[%s2968_s4 + $0x50] ss:$12 sps:$4 sm:$0xff]  }
  0x33   : > { %757 = vmatpush1.bf16.msra.mxu0 %v2221_v5  ;;  %v1916_v23 = vcombine.low %v2665_v22, %v2665_v22  ;;  %v2241_v36 = vld [vmem:[%s2968_s4 + $0x8] ss:$12 sps:$4 sm:$0xff]   ;;  %v2242_v37 = vld [vmem:[%s2968_s4 + $0x20] ss:$12 sps:$4 sm:$0xff]   ;;  %v2243_v38 = vld [vmem:[%s2968_s4 + $0x38] ss:$12 sps:$4 sm:$0xff]  }
  0x34   : > { %758 = vmatprep.subr.bf16.mxu0 %v2222_v6  ;;  %2079 = vmatprep.mubr.bf16.mxu1 %v592_v15  ;;  %v2245_v40 = vld [vmem:[%s2968_s4 + $0x68] ss:$12 sps:$4 sm:$0xff]   ;;  %v2246_v41 = vld [vmem:[%s2968_s4 + $0x80] ss:$12 sps:$4 sm:$0xff]   ;;  %v2247_v42 = vld [vmem:[%s2968_s4 + $0x98] ss:$12 sps:$4 sm:$0xff]  }
  0x35   : > { %2063 = vmatprep.subr.bf16.mxu1 %v2241_v36  ;;  %v2248_v43 = vld [vmem:[%s2968_s4 + $0xb0] ss:$12 sps:$4 sm:$0xff]   ;;  %v911_v46 = vadd.s32 16, %v2695_v45  ;;  %v2698_v47 = vand.u32 127, %v908_v44  ;;  %v910_v48 = vadd.s32 8, %v2695_v45  ;;  %vm974_vm6 = vcmask 1043456  }
  0x36   : > { %2064 = vmatpush3.bf16.msra.mxu1 %v2241_v36  ;;  %v2250_v36 = vld [vmem:[%s2969_s5 + $0x8] sm:$0xff]   ;;  %s3009_s29 = sld [smem:[#allocation18_spill]]  ;;  %vm2423_vm7 = vmmov 0   ;;  %s3010_s21 = sld [smem:[#allocation19_spill]] }
  0x37   : > { %759 = vmatpush1.bf16.msra.mxu0 %v2224_v7  ;;  %2065 = vmatprep.subr.bf16.mxu1 %v2242_v37  ;;  %vm917_vm0 = vcmp.lt.s32.totalorder %v2698_v47, 8  ;;  %vm923_vm1 = vcmp.le.s32.totalorder %v2698_v47, %v911_v46  ;;  %vm922_vm3 = vcmp.le.s32.totalorder %v2698_v47, %v910_v48  ;;  %v2259_v44 = vld [vmem:[%s2970_s6 + $0x4] ss:$8 sps:$4 sm:$0xff]   ;;  %v2262_v46 = vld [vmem:[%s2970_s6 + $0x14] ss:$8 sps:$4 sm:$0xff]   ;;  %s3011_s26 = sld [smem:[#allocation9_spill]] }
  0x38   : > { %760 = vmatprep.subr.bf16.mxu0 %v2225_v8  ;;  %vm926_vm2 = vmor %vm917_vm0, %vm923_vm1  ;;  %v2260_v48 = vld [vmem:[%s2970_s6 + $0x10] ss:$8 sps:$4 sm:$0xff]   ;;  %v2292_v10 = vld [vmem:[%s2972_s8 + $0x28] sm:$0xff]   ;;  %s3014_s23 = sld [smem:[#allocation20_spill]]  ;;  %s2424_s22 = smov [#allocation3]  }
  0x39   : > { %vm925_vm5 = vmor %vm917_vm0, %vm922_vm3  ;;  %s2329_s30 = sshll.u32 %s2424_s22, 4  ;;  %s2330_s30 = int_to_ptr.vmem [resolvable:$false] %s2329_s30 }
  0x3a   : > { %2066 = vmatpush3.bf16.msra.mxu1 %v2242_v37  ;;  %v2251_v37 = vld [vmem:[%s2969_s5 + $0x10] sm:$0xff]   ;;  %s2331_s25 = scalar_lea.vmem %s2330_s30, 256 }
  0x3b   : > { %761 = vmatpush1.bf16.msra.mxu0 %v2227_v9  ;;  %2067 = vmatprep.subr.bf16.mxu1 %v2243_v38 }
  0x3c   : > { %762 = vmatprep.subr.bf16.mxu0 %v2228_v11 }
  0x3d   : > { %s1995_s27 = sshll.u32 %s3011_s26, 7 }
  0x3e   : > { %2068 = vmatpush3.bf16.msra.mxu1 %v2243_v38  ;;  %v2252_v38 = vld [vmem:[%s2969_s5 + $0x18] sm:$0xff]   ;;  %s2910_s28 = scalar_lea.hbm %s3014_s23, %s1995_s27 }
  0x3f   : > { %763 = vmatpush1.bf16.msra.mxu0 %v2230_v14  ;;  %2069 = vmatprep.subr.bf16.mxu1 %v2244_v39 }
  0x40   : > { %764 = vmatprep.subr.bf16.mxu0 %v2231_v16 }
  0x42   : > { %2070 = vmatpush3.bf16.msra.mxu1 %v2244_v39  ;;  %v2253_v39 = vld [vmem:[%s2969_s5 + $0x20] sm:$0xff]  }
  0x43   : > { %765 = vmatpush1.bf16.msra.mxu0 %v2233_v17  ;;  %2071 = vmatprep.subr.bf16.mxu1 %v2245_v40 }
  0x44   : > { %766 = vmatprep.subr.bf16.mxu0 %v2234_v18 }
  0x46   : > { %2072 = vmatpush3.bf16.msra.mxu1 %v2245_v40  ;;  %v2254_v40 = vld [vmem:[%s2969_s5 + $0x28] sm:$0xff]  }
  0x47   : > { %767 = vmatpush1.bf16.msra.mxu0 %v2236_v19  ;;  %2073 = vmatprep.subr.bf16.mxu1 %v2246_v41 }
  0x48   : > { %768 = vmatprep.subr.bf16.mxu0 %v2237_v20 }
  0x4a   : > { %2074 = vmatpush3.bf16.msra.mxu1 %v2246_v41  ;;  %v2255_v41 = vld [vmem:[%s2969_s5 + $0x30] sm:$0xff]  }
  0x4b   : > { %769 = vmatpush1.bf16.msra.mxu0 %v2239_v21  ;;  %2075 = vmatprep.subr.bf16.mxu1 %v2247_v42 }
  0x4e   : > { %787 = vmatmul.mubr.bf16.vlgmr.msra.gmra.mrb[0].mxu0 %v592_v15  ;;  %2076 = vmatpush3.bf16.msra.mxu1 %v2247_v42  ;;  %v2256_v42 = vld [vmem:[%s2969_s5 + $0x38] sm:$0xff]  }
  0x4f   : > { %796 = vmatprep.mubr.bf16.mxu0 %v2421_v3  ;;  %2077 = vmatprep.subr.bf16.mxu1 %v2248_v43 }
  0x52   : > { %2078 = vmatpush3.bf16.msra.mxu1 %v2248_v43  ;;  %v2257_v43 = vld [vmem:[%s2970_s6] ss:$8 sps:$4 sm:$0xff]  }
  0x55   : > { %2080 = vmatmul.mubr.bf16.vlgmr.msra.gmra.mrb[0].mxu1 %v1916_v23 }
  0x56   : > { %797 = vmatmul.mubr.bf16.gmra.mrb[4].mxu0 %v1916_v23 }
 0x121   : > { %v788_v24 = vpop.f32.mrb[0].mxu0 }
 0x122   : > { %v790_v25 = vpop.f32.mrb[1].mxu0 }
 0x123   : > { %v792_v26 = vpop.f32.mrb[2].mxu0 }
 0x124   : > { %v853_v27 = vpack.c.bf16 %v792_v26, %v788_v24  ;;  %v794_v28 = vpop.f32.mrb[3].mxu0  ;;  %v2249_v24 = vld [vmem:[%s2969_s5] sm:$0xff]  }
 0x125   : > { %v855_v29 = vpack.c.bf16 %v794_v28, %v790_v25 }
 0x126   : > { %2087 = vmatprep.mubr.bf16.mxu0 %v853_v27 }
 0x127   : > { %2083 = vmatprep.subr.bf16.mxu0 %v855_v29 }
 0x128   : > { %2084 = vmatpush3.bf16.xpose.msra.mxu0 %v855_v29  ;;  %v2081_v61 = vpop.f32.mrb[0].mxu1 }
 0x129   : > { %v798_v30 = vpop.f32.mrb[4].mxu0  ;;  %v839_v17 = vpop.f32.mrb[1].mxu1  ;;  %v967_v20 = vpack.c.bf16 %v2081_v61, %v2081_v61 }
 0x12a   : > { %v800_v31 = vpop.f32.mrb[5].mxu0  ;;  %v854_v35 = vpack.c.bf16 %v798_v30, %v798_v30  ;;  %v2082_v18 = vpop.f32.mrb[2].mxu1 }
 0x12b   : > { %v856_v32 = vpack.c.bf16 %v800_v31, %v800_v31  ;;  %v802_v33 = vpop.f32.mrb[6].mxu0  ;;  %v842_v19 = vpop.f32.mrb[3].mxu1  ;;  %v976_v23 = vsel %vm974_vm6, %v967_v20, 0 }
 0x12c   : > { %v803_v34 = vpop.f32.mrb[7].mxu0  ;;  %v966_v21 = vpack.c.bf16 %v842_v19, %v839_v17  ;;  %v2291_v17 = vld [vmem:[%s2972_s8 + $0x68] sm:$0xff]  }
 0x12d   : > { %2085 = vmatprep.subr.bf16.mxu0 %v856_v32 }
 0x12e   : > { %2091 = vmatprep.subr.bf16.mxu1 %v966_v21 }
 0x12f   : > { %2092 = vmatpush3.bf16.msra.mxu1 %v966_v21 }
 0x130   : > { %2086 = vmatpush3.bf16.xpose.msra.mxu0 %v856_v32  ;;  %2139 = vmatprep.subr.msk.bf16.mxu1 %vm974_vm6, %v967_v20 }
 0x131   : > { %1253 = vmatprep.subr.bf16.mxu0 %v2259_v44 }
 0x133   : > { %2094 = vmatpush3.bf16.msra.mxu1 %v976_v23 }
 0x134   : > { %2099 = vmatprep.subr.bf16.mxu1 %v2249_v24 }
 0x137   : > { %2088 = vmatmul.mubr.bf16.vlgmr.msra.gmra.mrb[8].mxu0 %v854_v35 }
 0x138   : > { %1285 = vmatprep.mubr.bf16.mxu0 %v2421_v3  ;;  %1254 = vmatpush1.bf16.msra.mxu0 %v2257_v43 }
 0x139   : > { %1255 = vmatprep.subr.bf16.mxu0 %v2262_v46 }
 0x13c   : > { %1256 = vmatpush1.bf16.msra.mxu0 %v2260_v48 }
 0x20a   : > { %v2089_v49 = vpop.f32.mrb[8].mxu0 }
 0x20b   : > { %v907_v50 = vmul.f32 0.088388346, %v2089_v49  ;;  %v891_v51 = vpop.f32.mrb[9].mxu0  ;;  %v2265_v49 = vld [vmem:[%s2970_s6 + $0x24] ss:$8 sps:$4 sm:$0xff]  }
 0x20c   : > { %v905_v52 = vmul.f32 0.088388346, %v891_v51  ;;  %v2090_v53 = vpop.f32.mrb[10].mxu0  ;;  %1257 = vmatprep.subr.bf16.mxu0 %v2265_v49  ;;  %v2268_v51 = vld [vmem:[%s2970_s6 + $0x34] ss:$8 sps:$4 sm:$0xff]  }
 0x20d   : > { %v894_v54 = vpop.f32.mrb[11].mxu0  ;;  %v929_v55 = vsel %vm926_vm2, %v907_v50, -1e+30  ;;  %v2263_v50 = vld [vmem:[%s2970_s6 + $0x20] ss:$8 sps:$4 sm:$0xff]  }
 0x20e   : > { %v906_v56 = vmul.f32 0.088388346, %v894_v54  ;;  %v937_v57 = vsel %vm930_vm4, %v929_v55, -inf  ;;  %v931_v58 = vsel %vm930_vm4, %v905_v52, -inf  ;;  %1258 = vmatpush1.bf16.msra.mxu0 %v2263_v50  ;;  %v2271_v53 = vld [vmem:[%s2970_s6 + $0x44] ss:$8 sps:$4 sm:$0xff]  }
 0x20f   : > { %938 = vmax.xlane.f32.xlu1 %v937_v57  ;;  %932 = vmax.xlane.f32.xlu0 %v931_v58  ;;  %v2269_v54 = vld [vmem:[%s2970_s6 + $0x40] ss:$8 sps:$4 sm:$0xff]  }
 0x210   : > { %v928_v59 = vsel %vm925_vm5, %v906_v56, -1e+30  ;;  %1259 = vmatprep.subr.bf16.mxu0 %v2268_v51  ;;  %v2272_v56 = vld [vmem:[%s2970_s6 + $0x50] ss:$8 sps:$4 sm:$0xff]  }
 0x211   : > { %v934_v60 = vsel %vm930_vm4, %v928_v59, -inf }
 0x213   : > { %935 = vmax.xlane.f32.xlu0 %v934_v60 }
 0x29c   : > { %v939_v62 = vpop.xlane.xlu1 %938  ;;  %v933_v63 = vpop.xlane.xlu0 %932 }
 0x29d   : > { %v942_v0 = vsub.f32 %v929_v55, %v939_v62  ;;  %v940_v1 = vsub.f32 %v905_v52, %v933_v63  ;;  %v2266_v52 = vld [vmem:[%s2970_s6 + $0x30] ss:$8 sps:$4 sm:$0xff]   ;;  %v2274_v55 = vld [vmem:[%s2970_s6 + $0x54] ss:$8 sps:$4 sm:$0xff]   ;;  %v2277_v63 = vld [vmem:[%s2970_s6 + $0x64] ss:$8 sps:$4 sm:$0xff]  }
 0x29e   : > { %1260 = vmatpush1.bf16.msra.mxu0 %v2266_v52 }
 0x29f   : > { %v943_v2 = vmul.f32 1.442695, %v940_v1  ;;  %v947_v4 = vmul.f32 1.442695, %v942_v0  ;;  %1261 = vmatprep.subr.bf16.mxu0 %v2271_v53  ;;  %v2275_v0 = vld [vmem:[%s2970_s6 + $0x60] ss:$8 sps:$4 sm:$0xff]  }
 0x2a0   : > { %v936_v5 = vpop.xlane.xlu0 %935  ;;  %v2280_v1 = vld [vmem:[%s2970_s6 + $0x74] ss:$8 sps:$4 sm:$0xff]  }
 0x2a1   : > { %v941_v6 = vsub.f32 %v928_v59, %v936_v5  ;;  %2305 = vpow2.f32 %v943_v2  ;;  %v2278_v2 = vld [vmem:[%s2970_s6 + $0x70] ss:$8 sps:$4 sm:$0xff]   ;;  %v2282_v5 = vld [vmem:[%s2972_s8] sm:$0xff]  }
 0x2a2   : > { %2307 = vpow2.f32 %v947_v4  ;;  %1262 = vmatpush1.bf16.msra.mxu0 %v2269_v54  ;;  %v2281_v4 = vld [vmem:[%s2972_s8 + $0x40] sm:$0xff]  }
 0x2a3   : > { %v945_v7 = vmul.f32 1.442695, %v941_v6  ;;  %1263 = vmatprep.subr.bf16.mxu0 %v2274_v55  ;;  %v2283_v6 = vld [vmem:[%s2972_s8 + $0x48] sm:$0xff]  }
 0x2a5   : > { %2309 = vpow2.f32 %v945_v7  ;;  %v2284_v7 = vld [vmem:[%s2972_s8 + $0x8] sm:$0xff]  }
 0x2a6   : > { %1264 = vmatpush1.bf16.msra.mxu0 %v2272_v56 }
 0x2a7   : > { %1265 = vmatprep.subr.bf16.mxu0 %v2277_v63 }
 0x2aa   : > { %1266 = vmatpush1.bf16.msra.mxu0 %v2275_v0  ;;  %v2301_v0 = vld [vmem:[%s2974_s10 + $0x20] sm:$0xff]  }
 0x2ab   : > { %v2306_v8 = vpop.eup %2305  ;;  %1267 = vmatprep.subr.bf16.mxu0 %v2280_v1  ;;  %v2302_v1 = vld [vmem:[%s2974_s10 + $0x28] sm:$0xff]  }
 0x2ac   : > { %v949_v9 = vsel %vm930_vm4, %v2306_v8, 0.0  ;;  %v2308_v11 = vpop.eup %2307 }
 0x2ad   : > { %950 = vadd.xlane.f32.xlu1 %v949_v9  ;;  %v955_v16 = vsel %vm930_vm4, %v2308_v11, 0.0  ;;  %v2286_v9 = vld [vmem:[%s2972_s8 + $0x10] sm:$0xff]  }
 0x2ae   : > { %1268 = vmatpush1.bf16.msra.mxu0 %v2278_v2  ;;  %v2303_v2 = vld [vmem:[%s2974_s10 + $0x30] sm:$0xff]  }
 0x2af   : > { %v2310_v14 = vpop.eup %2309 }
 0x2b0   : > { %v952_v15 = vsel %vm930_vm4, %v2310_v14, 0.0 }
 0x2b1   : > { %953 = vadd.xlane.f32.xlu0 %v952_v15  ;;  %956 = vadd.xlane.f32.xlu1 %v955_v16  ;;  %v2289_v15 = vld [vmem:[%s2972_s8 + $0x60] sm:$0xff]  }
 0x2b2   : > { %v2290_v16 = vld [vmem:[%s2972_s8 + $0x20] sm:$0xff]  }
 0x33a   : > { %v951_v25 = vpop.xlane.xlu1 %950 }
 0x33b   : > { %2311 = vrcp.f32 %v951_v25  ;;  %v590_v25 = vunpack.c.l.bf16 %v2665_v22  ;;  %v2296_v22 = vld [vmem:[%s2972_s8 + $0x38] sm:$0xff]  }
 0x33e   : > { %v954_v26 = vpop.xlane.xlu0 %953  ;;  %v957_v27 = vpop.xlane.xlu1 %956 }
 0x33f   : > { %2313 = vrcp.f32 %v954_v26 }
 0x340   : > { %2315 = vrcp.f32 %v957_v27 }
 0x345   : > { %v2312_v28 = vpop.eup %2311 }
 0x346   : > { %v961_v31 = vmul.f32 %v2312_v28, %v2306_v8  ;;  %v2285_v8 = vld [vmem:[%s2972_s8 + $0x50] sm:$0xff]  }
 0x349   : > { %v2314_v29 = vpop.eup %2313 }
 0x34a   : > { %v2316_v30 = vpop.eup %2315  ;;  %v962_v32 = vmul.f32 %v2314_v29, %v2310_v14  ;;  %v2288_v14 = vld [vmem:[%s2972_s8 + $0x18] sm:$0xff]   ;;  %v2297_v29 = vld [vmem:[%s2974_s10] sm:$0xff]  }
 0x34b   : > { %v963_v33 = vmul.f32 %v2316_v30, %v2308_v11  ;;  %v2287_v11 = vld [vmem:[%s2972_s8 + $0x58] sm:$0xff]   ;;  %v2422_v30 = vmov 0.0  }
 0x34c   : > { %v964_v34 = vpack.c.bf16 %v962_v32, %v961_v31  ;;  %2119 = vmatprep.subr.bf16.mxu0 %v2422_v30  ;;  %v2298_v31 = vld [vmem:[%s2974_s10 + $0x8] sm:$0xff]   ;;  %v2299_v32 = vld [vmem:[%s2974_s10 + $0x10] sm:$0xff]  }
 0x34d   : > { %v965_v35 = vpack.c.bf16 %v963_v33, %v963_v33  ;;  %v2300_v33 = vld [vmem:[%s2974_s10 + $0x18] sm:$0xff]  }
 0x34e   : > { %2095 = vmatprep.mubr.msk.bf16.mxu1 %vm930_vm4, %v964_v34  ;;  %v1165_v34 = vsub.s32 0, %v2695_v45 }
 0x34f   : > { %2096 = vmatmul.mubr.msk.bf16.vlgmr.msra.gmra.mrb[4].mxu1 %vm930_vm4, %v965_v35  ;;  %v1161_v35 = vld [vmem:[%s3009_s29] sm:$0x3]  ;;  %s1695_s29 = sshll.u32 %s521_s12, 4  ;;  %s1696_s29 = int_to_ptr.vmem [resolvable:$true] %s1695_s29 }
 0x350   : > { %2100 = vmatpush3.bf16.msra.mxu1 %v2249_v24  ;;  %s2325_s19 = scalar_lea.vmem %s1696_s29, 128  ;;  %p2332_p6 = scmp.lt.s32.totalorder %s1696_s29, %s2330_s30 }
 0x351   : > { %2101 = vmatprep.subr.bf16.mxu1 %v2250_v36  ;;  %p2326_p2 = scmp.ne.s32.totalorder %s1696_s29, %s2325_s19  ;;  %p2333_p7 = scmp.lt.s32.totalorder %s2331_s25, %s2325_s19 }
 0x353   : > { %p2327_p4 = pnand %p2326_p2, %p2544_p3  ;;  %p2334_p8 = por %p2333_p7, %p2332_p6 }
 0x354   : > { %2102 = vmatpush3.bf16.msra.mxu1 %v2250_v36  ;;  %v1169_v36 = vsub.s32 1, %v2695_v45 }
 0x355   : > { %2103 = vmatprep.subr.bf16.mxu1 %v2251_v37  ;;  %p2328_p5 = pneg %p2327_p4 }
 0x357   : > { %p2335_p10 = pnand %p2334_p8, %p2328_p5 }
 0x358   : > { %2104 = vmatpush3.bf16.msra.mxu1 %v2251_v37  ;;  %v1166_v37 = vrot.slane %v1161_v35, %v1165_v34 }
 0x359   : > { %2105 = vmatprep.subr.bf16.mxu1 %v2252_v38 }
 0x35c   : > { %2106 = vmatpush3.bf16.msra.mxu1 %v2252_v38  ;;  %v1170_v38 = vrot.slane %v1161_v35, %v1169_v36 }
 0x35d   : > { %2107 = vmatprep.subr.bf16.mxu1 %v2253_v39 }
 0x360   : > { %2108 = vmatpush3.bf16.msra.mxu1 %v2253_v39 }
 0x361   : > { %2109 = vmatprep.subr.bf16.mxu1 %v2254_v40 }
 0x364   : > { %2110 = vmatpush3.bf16.msra.mxu1 %v2254_v40 }
 0x365   : > { %2111 = vmatprep.subr.bf16.mxu1 %v2255_v41 }
 0x368   : > { %2112 = vmatpush3.bf16.msra.mxu1 %v2255_v41 }
 0x369   : > { %2113 = vmatprep.subr.bf16.mxu1 %v2256_v42 }
 0x36c   : > { %2114 = vmatpush3.bf16.msra.mxu1 %v2256_v42 }
 0x36d   : > { %2026 = vmatprep.subr.bf16.mxu1 %v2281_v4  ;;  %v2304_v4 = vld [vmem:[%s2974_s10 + $0x38] sm:$0xff]  }
 0x422   : > { %v2097_v57 = vpop.f32.mrb[4].mxu1 }
 0x423   : > { %v1012_v58 = vpop.f32.mrb[5].mxu1  ;;  %v1027_v62 = vpack.c.bf16 %v2097_v57, %v2097_v57 }
 0x424   : > { %v2098_v59 = vpop.f32.mrb[6].mxu1 }
 0x425   : > { %v1015_v60 = vpop.f32.mrb[7].mxu1 }
 0x426   : > { %v1026_v61 = vpack.c.bf16 %v1015_v60, %v1012_v58 }
 0x428   : > { %2115 = vmatprep.mubr.bf16.mxu1 %v1026_v61 }
 0x429   : > { %2116 = vmatmul.mubr.bf16.vlgmr.msra.gmra.mrb[8].mxu1 %v1027_v62 }
 0x42a   : > { %2027 = vmatpush3.bf16.msra.mxu1 %v2282_v5 }
 0x42b   : > { %2028 = vmatprep.subr.bf16.mxu1 %v2283_v6  ;;  %v1967_v6 = vld [vmem:[%s3010_s21] ss:$0 sm:$0xff] }
 0x42e   : > { %2029 = vmatpush3.bf16.msra.mxu1 %v2284_v7 }
 0x42f   : > { %2030 = vmatprep.subr.bf16.mxu1 %v2285_v8 }
 0x432   : > { %2031 = vmatpush3.bf16.msra.mxu1 %v2286_v9 }
 0x433   : > { %2032 = vmatprep.subr.bf16.mxu1 %v2287_v11 }
 0x436   : > { %2033 = vmatpush3.bf16.msra.mxu1 %v2288_v14 }
 0x437   : > { %2034 = vmatprep.subr.bf16.mxu1 %v2289_v15 }
 0x43a   : > { %2035 = vmatpush3.bf16.msra.mxu1 %v2290_v16 }
 0x43b   : > { %2036 = vmatprep.subr.bf16.mxu1 %v2291_v17 }
 0x43e   : > { %2037 = vmatpush3.bf16.msra.mxu1 %v2292_v10 }
 0x4fc   : > { %v2117_v18 = vpop.f32.mrb[8].mxu1 }
 0x4fd   : > { %v1126_v19 = vpop.f32.mrb[9].mxu1  ;;  %v2828_v27 = vadd.f32 %v2117_v18, %v590_v25 }
 0x4fe   : > { %v2118_v20 = vpop.f32.mrb[10].mxu1  ;;  %v2818_v23 = vadd.f32 %v1126_v19, %v2638_v13  ;;  %v2294_v13 = vld [vmem:[%s2972_s8 + $0x30] sm:$0xff]  }
 0x4ff   : > { %v1129_v21 = vpop.f32.mrb[11].mxu1  ;;  %v1144_v28 = vpack.c.bf16 %v2828_v27, %v2828_v27 }
 0x500   : > { %v2822_v24 = vadd.f32 %v1129_v21, %v589_v12  ;;  %v2293_v12 = vld [vmem:[%s2972_s8 + $0x70] sm:$0xff]  }
 0x501   : > { %2038 = vmatprep.subr.bf16.mxu1 %v2293_v12 }
 0x502   : > { %v1143_v26 = vpack.c.bf16 %v2822_v24, %v2818_v23  ;;  %2039 = vmatpush3.bf16.msra.mxu1 %v2294_v13 }
 0x504   : > { %1286 = vmatmul.mubr.bf16.vlgmr.msra.gmra.mrb[12].mxu0 %v1143_v26 }
 0x505   : > { %1295 = vmatprep.mubr.bf16.mxu0 %v2421_v3  ;;  %v2295_v3 = vld [vmem:[%s2972_s8 + $0x78] sm:$0xff]   ;;  %2120 = vmatpush3.bf16.msra.mxu0 %v2297_v29  ;;  %v1611_v29 = vld [vmem:[%s2582_s16 + $0x8] sm:$0xff] }
 0x506   : > { %2040 = vmatprep.subr.bf16.mxu1 %v2295_v3  ;;  %2121 = vmatprep.subr.bf16.mxu0 %v2422_v30 }
 0x507   : > { %2041 = vmatpush3.bf16.msra.mxu1 %v2296_v22 }
 0x509   : > { %2122 = vmatpush3.bf16.msra.mxu0 %v2298_v31  ;;  %v1610_v31 = vld [vmem:[%s2582_s16] sm:$0xff] }
 0x50a   : > { %2123 = vmatprep.subr.bf16.mxu0 %v2422_v30 }
 0x50c   : > { %1296 = vmatmul.mubr.bf16.gmra.mrb[16].mxu0 %v1144_v28 }
 0x50d   : > { %2124 = vmatpush3.bf16.msra.mxu0 %v2299_v32  ;;  %2135 = vmatprep.mubr.msk.bf16.mxu0 %vm2423_vm7, %v2422_v30 }
 0x50e   : > { %2125 = vmatprep.subr.bf16.mxu0 %v2422_v30 }
 0x511   : > { %2126 = vmatpush3.bf16.msra.mxu0 %v2300_v33 }
 0x512   : > { %2127 = vmatprep.subr.bf16.mxu0 %v2422_v30 }
 0x515   : > { %2128 = vmatpush3.bf16.msra.mxu0 %v2301_v0 }
 0x516   : > { %2129 = vmatprep.subr.bf16.mxu0 %v2422_v30 }
 0x519   : > { %2130 = vmatpush3.bf16.msra.mxu0 %v2302_v1 }
 0x51a   : > { %2131 = vmatprep.subr.bf16.mxu0 %v2422_v30 }
 0x51d   : > { %2132 = vmatpush3.bf16.msra.mxu0 %v2303_v2 }
 0x51e   : > { %2133 = vmatprep.subr.bf16.mxu0 %v2422_v30 }
 0x521   : > { %2134 = vmatpush3.bf16.msra.mxu0 %v2304_v4 }
 0x5d7   : > { %v1287_v39 = vpop.f32.mrb[12].mxu0 }
 0x5d8   : > { %v1288_v40 = vadd.f32 %v1287_v39, %v1166_v37  ;;  %v1289_v41 = vpop.f32.mrb[13].mxu0 }
 0x5d9   : > { %v1290_v42 = vadd.f32 %v1289_v41, %v1170_v38  ;;  %v1291_v43 = vpop.f32.mrb[14].mxu0 }
 0x5da   : > { %v1292_v44 = vadd.f32 %v1291_v43, %v1166_v37  ;;  %v1293_v46 = vpop.f32.mrb[15].mxu0  ;;  %v1304_v49 = vmax.f32 %v1288_v40, 0.0 }
 0x5db   : > { %v1294_v48 = vadd.f32 %v1293_v46, %v1170_v38  ;;  %v1305_v51 = vmax.f32 %v1290_v42, 0.0 }
 0x5dc   : > { %v1306_v50 = vmax.f32 %v1292_v44, 0.0 }
 0x5dd   : > { %v1307_v52 = vmax.f32 %v1294_v48, 0.0 }
 0x5de   : > { %v1310_v53 = vpack.c.bf16 %v1306_v50, %v1304_v49 }
 0x5df   : > { %v1311_v54 = vpack.c.bf16 %v1307_v52, %v1305_v51  ;;  %v1297_v55 = vpop.f32.mrb[16].mxu0 }
 0x5e0   : > { %v1298_v56 = vadd.f32 %v1297_v55, %v1166_v37  ;;  %v1299_v57 = vpop.f32.mrb[17].mxu0 }
 0x5e1   : > { %v1300_v45 = vadd.f32 %v1299_v57, %v1170_v38  ;;  %v1301_v58 = vpop.f32.mrb[18].mxu0  ;;  %1481 = vmatprep.mubr.bf16.mxu1 %v1311_v54 }
 0x5e2   : > { %v1302_v59 = vpop.f32.mrb[19].mxu0  ;;  %1482 = vmatmul.mubr.bf16.vlgmr.msra.gmra.mrb[12].mxu1 %v1310_v53  ;;  %v1308_v61 = vmax.f32 %v1298_v56, 0.0 }
 0x5e3   : > { %v1309_v60 = vmax.f32 %v1300_v45, 0.0 }
 0x5e4   : > { %v1312_v63 = vpack.c.bf16 %v1308_v61, %v1308_v61 }
 0x5e5   : > { %v1313_v62 = vpack.c.bf16 %v1309_v60, %v1309_v60 }
 0x5e7   : > { %1489 = vmatprep.mubr.bf16.mxu1 %v1313_v62 }
 0x5ea   : > { %1490 = vmatmul.mubr.bf16.gmra.mrb[16].mxu1 %v1312_v63 }
 0x6b5   : > { %v2042_v5 = vpop.f32.mrb[12].mxu1 }
 0x6b6   : > { %v2043_v7 = vpop.f32.mrb[13].mxu1 }
 0x6b7   : > { %v2044_v8 = vadd.f32 %v2043_v7, %v2042_v5  ;;  %v2045_v9 = vpop.f32.mrb[14].mxu1 }
 0x6b8   : > { %v2046_v11 = vpop.f32.mrb[15].mxu1 }
 0x6b9   : > { %v1484_v14 = vadd.f32 %v2044_v8, %v1967_v6  ;;  %v2047_v15 = vadd.f32 %v2046_v11, %v2045_v9 }
 0x6bb   : > { %v1497_v16 = vadd.f32 %v1484_v14, %v2818_v23  ;;  %v1487_v19 = vadd.f32 %v2047_v15, %v1967_v6 }
 0x6bd   : > { %1500 = vst [vmem:[#allocation2] sm:$0xff] %v1497_v16  ;;  %1501 = vst [vmem:[%s521_s12] sm:$0xff] %v1497_v16  ;;  %v2048_v17 = vpop.f32.mrb[16].mxu1  ;;  %v1498_v28 = vadd.f32 %v1487_v19, %v2822_v24 }
 0x6be   : > { %v2049_v18 = vpop.f32.mrb[17].mxu1 }
 0x6bf   : > { %v2050_v20 = vadd.f32 %v2049_v18, %v2048_v17  ;;  %v2051_v21 = vpop.f32.mrb[18].mxu1 }
 0x6c0   : > { %v2052_v25 = vpop.f32.mrb[19].mxu1 }
 0x6c1   : > { %v1492_v26 = vadd.f32 %v2050_v20, %v1967_v6 }
 0x6c3   : > { %v1499_v10 = vadd.f32 %v1492_v26, %v2828_v27 }
 0x6c5   : > { %v1502_v12 = vpack.c.bf16 %v1499_v10, %v1498_v28 }
 0x6c7   : > { %2136 = vmatmul.mubr.bf16.vlgmr.msra.gmra.mrb[20].mxu0 %v1502_v12 }
 0x79a   : > { %v1601_v23 = vpop.f32.mrb[20].mxu0 }
 0x79b   : > { %1608 = vst [vmem:[%s2592_s7] sm:$0xff] %v1601_v23  ;;  %1614 = vmax.xlane.f32.xlu0 %v1601_v23  ;;  %v2137_v13 = vpop.f32.mrb[21].mxu0 }
 0x79c   : > { %v1604_v3 = vpop.f32.mrb[22].mxu0 }
 0x79d   : > { %1609 = vst [vmem:[%s2592_s7 + $0x8] sm:$0xff] %v1604_v3  ;;  %1616 = vmax.xlane.f32.xlu1 %v1604_v3  ;;  %v2138_v22 = vpop.f32.mrb[23].mxu0  ;;  %s3012_s7 = sld [smem:[#allocation7_spill]] }
 0x7a3   : > { %s3015_s14 = sand.u32 1, %s3012_s7  }
 0x7a4   : > { %s1669_s15 = scalar_lea.sflag [#allocation4], %s3015_s14 }
 0x7ae   : > { %1638 = vperm.xlu1 %2215, %v1611_v29  }
 0x7b1   : > { %1635 = vperm.xlu0 %2214, %v1610_v31  }
 0x828   : > { %v1615_v32 = vpop.xlane.xlu0 %1614 }
 0x829   : > { %v1618_v33 = vsub.f32 %v1601_v23, %v1615_v32 }
 0x82a   : > { %v2897_v34 = vpop.xlane.xlu1 %1616 }
 0x82b   : > { %v1620_v24 = vmul.f32 1.442695, %v1618_v33  ;;  %v1619_v27 = vsub.f32 %v1604_v3, %v2897_v34 }
 0x82d   : > { %2317 = vpow2.f32 %v1620_v24  ;;  %v1622_v35 = vmul.f32 1.442695, %v1619_v27 }
 0x82e   : > { %v1639_v37 = vpop.permute.xlu1 %1638 }
 0x82f   : > { %2319 = vpow2.f32 %v1622_v35  ;;  %vm1641_vm9 = vcmp.eq.s32.totalorder %v2698_v47, %v1639_v37 }
 0x830   : > { %v1636_v36 = vpop.permute.xlu0 %1635  ;;  %v1993_v42 = vsel %vm1641_vm9, 1.0, %v2422_v30 }
 0x831   : > { %vm1640_vm8 = vcmp.eq.s32.totalorder %v2698_v47, %v1636_v36  ;;  %v1647_v43 = vmul.f32 %v1993_v42, %v1604_v3 }
 0x832   : > { %v1992_v39 = vsel %vm1640_vm8, 1.0, %v2422_v30 }
 0x833   : > { %v1646_v41 = vmul.f32 %v1992_v39, %v1601_v23 }
 0x837   : > { %v2318_v38 = vpop.eup %2317 }
 0x838   : > { %1624 = vadd.xlane.f32.xlu1 %v2318_v38 }
 0x839   : > { %v2320_v40 = vpop.eup %2319 }
 0x83a   : > { %1626 = vadd.xlane.f32.xlu0 %v2320_v40 }
 0x83c   : > { %1648 = vadd.xlane.f32.xlu1 %v1646_v41 }
 0x840   : > { %1650 = vadd.xlane.f32.xlu1 %v1647_v43 }
 0x841   : > { %2338 = shalt.err (!%p2335_p10)
}
 0x842   : > { %s2339_s17 = scalar_lea.hbm %s2910_s28, 128  ;;  %s2343_s26 = scalar_lea.hbm %s3014_s23, 256 }
 0x843   : > { %p2340_p11 = scmp.ne.s32.totalorder %s2910_s28, %s2339_s17  ;;  %p2344_p0 = scmp.lt.u32.totalorder %s2910_s28, %s3014_s23 }
 0x844   : > { %p2345_p1 = scmp.lt.u32.totalorder %s2343_s26, %s2339_s17  ;;  %p2347_p4 = scmp.lt.u32.totalorder %s2339_s17, %s2910_s28 }
 0x845   : > { %p2341_p12 = pnand %p2340_p11, %p2544_p3 }
 0x846   : > { %p2346_p2 = por %p2345_p1, %p2344_p0 }
 0x847   : > { %p2342_p13 = pneg %p2341_p12 }
 0x848   : > { %p2348_p5 = por %p2347_p4, %p2346_p2 }
 0x84a   : > { %p2349_p6 = pnand %p2348_p5, %p2342_p13 }
 0x84c   : > { %2352 = shalt.err (!%p2349_p6)
}
 0x84d   : > { %2140 = dma.vmem_to_hbm [thread:$0]  (%p2544_p3), %s1696_s29, 128, %s2910_s28, %s1669_s15   ;;  %v1612_v52 = vld [vmem:[%s2587_s9] sm:$0xff]  ;;  %vm1656_vm10 = vcmask 7168   ;;  %v1613_v55 = vld [vmem:[%s2587_s9 + $0x8] sm:$0xff] }
 0x8c5   : > { %v1625_v47 = vpop.xlane.xlu1 %1624 }
 0x8c6   : > { %2321 = vlog2.f32 %v1625_v47 }
 0x8c7   : > { %v1627_v30 = vpop.xlane.xlu0 %1626 }
 0x8c8   : > { %2323 = vlog2.f32 %v1627_v30 }
 0x8c9   : > { %v1649_v46 = vpop.xlane.xlu1 %1648 }
 0x8cd   : > { %v1651_v56 = vpop.xlane.xlu1 %1650 }
 0x8d0   : > { %v2322_v44 = vpop.eup %2321 }
 0x8d1   : > { %v1629_v48 = vmul.f32 0.6931472, %v2322_v44 }
 0x8d2   : > { %v2324_v49 = vpop.eup %2323 }
 0x8d3   : > { %v1631_v50 = vmul.f32 0.6931472, %v2324_v49  ;;  %v1632_v51 = vadd.f32 %v1629_v48, %v1615_v32 }
 0x8d5   : > { %v1652_v53 = vsub.f32 %v1632_v51, %v1649_v46  ;;  %v1633_v54 = vadd.f32 %v1631_v50, %v2897_v34 }
 0x8d7   : > { %v1654_v57 = vmul.f32 %v1652_v53, %v1612_v52  ;;  %v1653_v45 = vsub.f32 %v1633_v54, %v1651_v56 }
 0x8d9   : > { %1657 = vst.msk [vmem:[%s2597_s24] sm:$0xff] %vm1656_vm10, %v1654_v57  ;;  %v1655_v58 = vmul.f32 %v1653_v45, %v1613_v55 }
 0x8db   : > { %1658 = vst.msk [vmem:[%s2597_s24 + $0x8] sm:$0xff] %vm1656_vm10, %v1655_v58 }
 0x8dc PF: > { %s3016_s16 = sld [smem:[#allocation12_spill]]  ;;  %s3017_s29 = sld [smem:[#allocation6_spill]] }
 0x8e2   : > { %p2146_p3 = scmp.ge.s32.totalorder %s3016_s16, 2  ;;  %s1723_s20 = sand.u32 1, %s3017_s29  }
 0x8e3   : > { %s1724_s28 = scalar_lea.sflag [#allocation4], %s1723_s20 }
 0x8e4   : > { %p2143_p7 = pnand %p2146_p3, %p2554_p9 }
 0x8e6   : > { %2386 = dma.done.wait (!%p2143_p7), %s1724_s28, 128  }
 0x8e7   : > { %2388 = vsyncadd (!%p2143_p7), %s1724_s28, 4294967168  ;;  %s27_s15 = sadd.s32 1, %s3016_s16   ;;  %s3019_s25 = sld [smem:[#allocation7_spill]] }
 0x8e8   : > { %p24_p8 = scmp.ge.s32.totalorder %s27_s15, 6   ;;  %s3020_s26 = sld [smem:[#allocation8_spill]] }
 0x8e9   : > { %s3021_s27 = sld [smem:[#allocation17_spill]]  ;;  %s3022_s28 = sld [smem:[#allocation10_spill]] }
 0x8ea   : > { %s3023_s29 = sld [smem:[#allocation11_spill]]  ;;  %s3024_s30 = sld [smem:[#allocation13_spill]] }
 0x8eb   : > { %s3025_s14 = sld [smem:[#allocation15_spill]]  ;;  %26 = sbr.rel (!%p24_p8) target bundleno = 9 (0x9), region = 133 }
 0x8f2   :  { %1741 = vsyncpa [#allocation4], 1 }
 0x8f3   :  { %1743 = vsyncpa [#allocation4 + $0x1], 1 }

</bundles_post_ra>
